<compile_context>
chip_gen: v6e
topology: v6e:2x2x1
jax: 0.10.0
libtpu: 0.0.40
codegen_flags: <defaults>
</compile_context>

<pallas_src>
import math
import jax
import jax.numpy as jnp
from jax.experimental import pallas as pl
from jax.experimental.pallas import tpu as pltpu

_BN_EPS = 1e-5
_FEAT_PAD = 128      # lane-dense feature width (16 / 64 / 32 all pad to 128)
_TM = 128            # node-dimension tile for the tiled path


def _round_up(n, m):
    return ((n + m - 1) // m) * m


def _pad2d(a, rows, cols):
    return jnp.pad(a, ((0, rows - a.shape[0]), (0, cols - a.shape[1])))


def _fold_bn(bn):
    """Eval-mode BatchNorm1d folded to per-channel (scale, shift), f32."""
    scale = bn["gamma"] * jax.lax.rsqrt(bn["var"] + _BN_EPS)
    shift = bn["beta"] - bn["mean"] * scale
    return scale, shift


def _adjacency_and_invdeg(edge_index, num_nodes, np_):
    """int8 edge-count adjacency (rows = dst) + exact f32 reciprocal in-degree."""
    # TODO(synk): densified adjacency; a sparse CSR/segment-sum gather kernel is needed
    # for graphs too large for a dense (N, N) matrix.
    src, dst = edge_index[0], edge_index[1]
    counts = jnp.zeros((num_nodes, num_nodes), jnp.float32).at[dst, src].add(1.0)
    deg = jnp.sum(counts, axis=1, keepdims=True)
    inv_deg = jnp.where(deg > 0, 1.0 / jnp.maximum(deg, 1.0), 0.0)
    a_i8 = _pad2d(counts, np_, np_).astype(jnp.int8)   # small exact integer counts
    inv_deg_p = _pad2d(inv_deg, np_, 1)                # padded rows -> 0 (isolated)
    return a_i8, inv_deg_p


def _pack_layer(conv, bn, fin_pad, fout_pad):
    """Fold eval-mode BN into the SAGE weights; stack [Wl; Wr] for one K=2*Fin dot."""
    scale, shift = _fold_bn(bn)                       # (fout,), f32
    wl_t = conv["wl"].T * scale[None, :]              # (fin, fout) neighbour proj
    wr_t = conv["wr"].T * scale[None, :]              # (fin, fout) root proj
    merged_shift = conv["bl"] * scale + shift         # bias*scale + shift
    fin, fout = wl_t.shape
    w = jnp.zeros((2 * fin_pad, fout_pad), jnp.float32)
    w = w.at[:fin, :fout].set(wl_t)
    w = w.at[fin_pad:fin_pad + fin, :fout].set(wr_t)
    s = jnp.zeros((1, fout_pad), jnp.float32).at[0, :fout].set(merged_shift)
    return w.astype(jnp.bfloat16), s


# ---------------------------------------------------------------------------
# Fused two-layer kernel (whole padded graph resident in VMEM, grid-less call).
# ---------------------------------------------------------------------------
def _fused_two_layer_kernel(a_ref, invdeg_ref, h_ref, w1_ref, s1_ref,
                            w2_ref, s2_ref, out_ref):
    a_bf = a_ref[...].astype(jnp.bfloat16)       # int8 counts -> bf16 (VPU, exact)
    inv_deg = invdeg_ref[...]                    # (Np, 1) f32, exact 1/deg

    # ---- layer 1: SAGE + folded BN + ReLU ----
    agg = jnp.dot(a_bf, h_ref[...], preferred_element_type=jnp.float32) * inv_deg
    z = jnp.concatenate([agg.astype(jnp.bfloat16), h_ref[...]], axis=-1)
    y = jnp.dot(z, w1_ref[...], preferred_element_type=jnp.float32) + s1_ref[...]
    h1 = jnp.maximum(y, 0.0).astype(jnp.bfloat16)

    # ---- layer 2: reuse resident A, H1 never leaves VMEM ----
    agg2 = jnp.dot(a_bf, h1, preferred_element_type=jnp.float32) * inv_deg
    z2 = jnp.concatenate([agg2.astype(jnp.bfloat16), h1], axis=-1)
    y2 = jnp.dot(z2, w2_ref[...], preferred_element_type=jnp.float32) + s2_ref[...]
    out_ref[...] = jnp.maximum(y2, 0.0).astype(out_ref.dtype)


def _fused_two_layer_call(a_i8, inv_deg, h_p, w1, s1, w2, s2):
    np_, f = h_p.shape
    fout = w2.shape[1]
    flops = 2 * (2 * np_ * np_ * f) + 2 * (2 * np_ * (2 * f) * f)
    bytes_accessed = int(sum(a.size * a.dtype.itemsize
                             for a in (a_i8, inv_deg, h_p, w1, s1, w2, s2)))
    bytes_accessed += np_ * fout * 2
    return pl.pallas_call(
        _fused_two_layer_kernel,
        out_shape=jax.ShapeDtypeStruct((np_, fout), jnp.bfloat16),
        compiler_params=pltpu.CompilerParams(vmem_limit_bytes=48 << 20),
        cost_estimate=pl.CostEstimate(flops=flops, transcendentals=0,
                                      bytes_accessed=bytes_accessed),
    )(a_i8, inv_deg, h_p, w1, s1, w2, s2)


# ---------------------------------------------------------------------------
# Node-tiled per-layer kernel (fallback for graphs too large for the fused path).
# ---------------------------------------------------------------------------
def _sage_layer_kernel(a_ref, invdeg_ref, h_ref, w_ref, s_ref, out_ref):
    tm = a_ref.shape[0]
    row0 = pl.multiple_of(pl.program_id(0) * tm, tm)
    h_tile = h_ref[pl.ds(row0, tm), :]           # root term from resident H (no DMA)
    a_bf = a_ref[...].astype(jnp.bfloat16)       # int8 counts -> bf16
    agg = (jnp.dot(a_bf, h_ref[...], preferred_element_type=jnp.float32)
           * invdeg_ref[...])
    z = jnp.concatenate([agg.astype(jnp.bfloat16), h_tile], axis=-1)
    y = jnp.dot(z, w_ref[...], preferred_element_type=jnp.float32) + s_ref[...]
    out_ref[...] = jnp.maximum(y, 0.0).astype(out_ref.dtype)


def _sage_layer_tiled(a_i8, inv_deg, h_p, w, s, *, tm=_TM):
    # TODO(synk): add a second (reduction) grid axis tiling the contraction dim for
    # graphs whose full-row A tiles / resident H exceed per-TC VMEM (v7x: 64 MiB).
    np_, fin = h_p.shape
    fout = w.shape[1]
    grid = (np_ // tm,)
    flops = 2 * np_ * np_ * fin + 2 * np_ * (2 * fin) * fout
    bytes_accessed = int(sum(a.size * a.dtype.itemsize
                             for a in (a_i8, inv_deg, h_p, w, s)))
    bytes_accessed += np_ * fout * 2

    def resident(shape):  # constant-index operands: single-buffered (saves VMEM)
        return pl.BlockSpec(shape, lambda i: (0, 0), pipeline_mode=pl.Buffered(1))

    return pl.pallas_call(
        _sage_layer_kernel,
        out_shape=jax.ShapeDtypeStruct((np_, fout), jnp.bfloat16),
        grid=grid,
        in_specs=[
            pl.BlockSpec((tm, np_), lambda i: (i, 0)),   # int8 A node-tile (streamed)
            pl.BlockSpec((tm, 1), lambda i: (i, 0)),     # exact f32 1/deg node-tile
            resident((np_, fin)),                        # full H (VMEM-resident)
            resident((2 * fin, fout)),                   # stacked [Wl;Wr], BN folded
            resident((1, fout)),                         # merged shift
        ],
        out_specs=pl.BlockSpec((tm, fout), lambda i: (i, 0)),
        compiler_params=pltpu.CompilerParams(
            dimension_semantics=("parallel",),           # shard node tiles across TCs
            vmem_limit_bytes=48 << 20,
        ),
        cost_estimate=pl.CostEstimate(flops=flops, transcendentals=0,
                                      bytes_accessed=bytes_accessed),
    )(a_i8, inv_deg, h_p, w, s)


# ---------------------------------------------------------------------------
# Wrapper
# ---------------------------------------------------------------------------
def topology_extraction_forward(x, edge_index, params, *, tm=_TM,
                                feat_pad=_FEAT_PAD, mode="auto"):
    n = x.shape[0]
    np_ = _round_up(max(n, tm), tm)
    out_dim = params["conv2"]["wl"].shape[0]

    a_i8, inv_deg = _adjacency_and_invdeg(edge_index, n, np_)
    h = _pad2d(x.astype(jnp.float32), np_, feat_pad).astype(jnp.bfloat16)

    w1, s1 = _pack_layer(params["conv1"], params["bn1"], feat_pad, feat_pad)
    w2, s2 = _pack_layer(params["conv2"], params["bn2"], feat_pad, feat_pad)

    if mode == "auto":
        # rough fused-path VMEM estimate: int8 A + bf16 A copy + activations
        fused_bytes = 3 * np_ * np_ + 14 * np_ * feat_pad
        mode = "fused" if fused_bytes < (20 << 20) else "tiled"

    if mode == "fused":
        out = _fused_two_layer_call(a_i8, inv_deg, h, w1, s1, w2, s2)
    else:
        h1 = _sage_layer_tiled(a_i8, inv_deg, h, w1, s1, tm=tm)
        out = _sage_layer_tiled(a_i8, inv_deg, h1, w2, s2, tm=tm)

    return out[:n, :out_dim].astype(jnp.float32)


def topology_extraction_reference(x, edge_index, params):
    """Pure-JAX reference mirroring the kernel's bf16-operand / f32-accumulate math."""
    n = x.shape[0]
    src, dst = edge_index[0], edge_index[1]
    counts = jnp.zeros((n, n), jnp.float32).at[dst, src].add(1.0)
    deg = counts.sum(axis=1, keepdims=True)
    inv_deg = jnp.where(deg > 0, 1.0 / jnp.maximum(deg, 1.0), 0.0)
    a_bf = counts.astype(jnp.bfloat16)   # small integer counts, exact in bf16

    def layer(h_bf, conv, bn):
        scale, shift = _fold_bn(bn)
        wl_t = (conv["wl"].T * scale[None, :]).astype(jnp.bfloat16)
        wr_t = (conv["wr"].T * scale[None, :]).astype(jnp.bfloat16)
        merged_shift = conv["bl"] * scale + shift
        agg = jnp.dot(a_bf, h_bf, preferred_element_type=jnp.float32) * inv_deg
        y = jnp.dot(agg.astype(jnp.bfloat16), wl_t, preferred_element_type=jnp.float32)
        y = y + jnp.dot(h_bf, wr_t, preferred_element_type=jnp.float32)
        y = y + merged_shift[None, :]
        return jnp.maximum(y, 0.0).astype(jnp.bfloat16)

    h1 = layer(x.astype(jnp.bfloat16), params["conv1"], params["bn1"])
    h2 = layer(h1, params["conv2"], params["bn2"])
    return h2.astype(jnp.float32)


def init_params(key, in_channels, hidden=64, out_channels=32):
    """Deterministic params matching Topology_Extraction shapes (eval mode)."""
    ks = jax.random.split(key, 8)

    def linear_w(k, fin, fout):
        bound = 1.0 / math.sqrt(fin)
        return jax.random.uniform(k, (fout, fin), minval=-bound, maxval=bound,
                                  dtype=jnp.float32)

    def linear_b(k, fin, fout):
        bound = 1.0 / math.sqrt(fin)
        return jax.random.uniform(k, (fout,), minval=-bound, maxval=bound,
                                  dtype=jnp.float32)

    def bn_params(k, c):
        kg, kb, km, kv = jax.random.split(k, 4)
        return {
            "gamma": 1.0 + 0.1 * jax.random.normal(kg, (c,), dtype=jnp.float32),
            "beta": 0.1 * jax.random.normal(kb, (c,), dtype=jnp.float32),
            "mean": 0.1 * jax.random.normal(km, (c,), dtype=jnp.float32),
            "var": jax.random.uniform(kv, (c,), minval=0.5, maxval=1.5,
                                      dtype=jnp.float32),
        }

    return {
        "conv1": {"wl": linear_w(ks[0], in_channels, hidden),      # neighbour proj
                  "bl": linear_b(ks[1], in_channels, hidden),
                  "wr": linear_w(ks[2], in_channels, hidden)},     # root proj
        "bn1": bn_params(ks[3], hidden),
        "conv2": {"wl": linear_w(ks[4], hidden, out_channels),
                  "bl": linear_b(ks[5], hidden, out_channels),
                  "wr": linear_w(ks[6], hidden, out_channels)},
        "bn2": bn_params(ks[7], out_channels),
    }


if __name__ == "__main__":
    key = jax.random.PRNGKey(0)
    k_x, k_e1, k_e2, k_p = jax.random.split(key, 4)

    num_nodes, num_edges, in_channels = 40, 160, 16
    x = jax.random.normal(k_x, (num_nodes, in_channels), dtype=jnp.float32)
    src = jax.random.randint(k_e1, (num_edges,), 0, num_nodes)
    dst = jax.random.randint(k_e2, (num_edges,), 0, num_nodes)
    edge_index = jnp.stack([src, dst], axis=0)

    params = init_params(k_p, in_channels)

    ref = topology_extraction_reference(x, edge_index, params)

    out_fused = jax.block_until_ready(
        topology_extraction_forward(x, edge_index, params, mode="fused"))
    out_tiled = jax.block_until_ready(
        topology_extraction_forward(x, edge_index, params, mode="tiled"))

    assert out_fused.shape == (num_nodes, 32), out_fused.shape
    assert out_tiled.shape == (num_nodes, 32), out_tiled.shape
    assert jnp.allclose(out_fused, ref, atol=2e-2, rtol=2e-2), \
        float(jnp.max(jnp.abs(out_fused - ref)))
    assert jnp.allclose(out_tiled, ref, atol=2e-2, rtol=2e-2), \
        float(jnp.max(jnp.abs(out_tiled - ref)))

    print("KERNEL_OK")
</pallas_src>

<mosaic_0001>
module attributes {stable_mosaic.version = 11 : i64} {
  func.func @_fused_two_layer_kernel(%arg0: memref<128x128xi8, #tpu.memory_space<vmem>>, %arg1: memref<128x1xf32, #tpu.memory_space<vmem>>, %arg2: memref<128x128xbf16, #tpu.memory_space<vmem>>, %arg3: memref<256x128xbf16, #tpu.memory_space<vmem>>, %arg4: memref<1x128xf32, #tpu.memory_space<vmem>>, %arg5: memref<256x128xbf16, #tpu.memory_space<vmem>>, %arg6: memref<1x128xf32, #tpu.memory_space<vmem>>, %arg7: memref<128x128xbf16, #tpu.memory_space<vmem>>) attributes {dimension_semantics = [], scalar_prefetch = 0 : i64, scratch_operands = 0 : i64, tpu.core_type = #tpu.core_type<tc>} {
    %c0 = arith.constant 0 : index
    %c0_0 = arith.constant 0 : index
    %0 = vector.load %arg0[%c0, %c0_0] : memref<128x128xi8, #tpu.memory_space<vmem>>, vector<128x128xi8>
    %1 = arith.sitofp %0 : vector<128x128xi8> to vector<128x128xbf16>
    %c0_1 = arith.constant 0 : index
    %c0_2 = arith.constant 0 : index
    %2 = vector.load %arg1[%c0_1, %c0_2] : memref<128x1xf32, #tpu.memory_space<vmem>>, vector<128x1xf32>
    %c0_3 = arith.constant 0 : index
    %c0_4 = arith.constant 0 : index
    %3 = vector.load %arg2[%c0_3, %c0_4] : memref<128x128xbf16, #tpu.memory_space<vmem>>, vector<128x128xbf16>
    %cst = arith.constant dense<0.000000e+00> : vector<128x128xf32>
    %4 = tpu.matmul %1, %3, %cst {dimension_numbers = #tpu.dot_dimension_numbers<[1], [0], [0], [1], [0, 0, 1, 1], [], []>} : vector<128x128xbf16>, vector<128x128xbf16>, vector<128x128xf32> -> vector<128x128xf32>
    %5 = vector.broadcast %2 : vector<128x1xf32> to vector<128x128xf32>
    %6 = arith.mulf %4, %5 : vector<128x128xf32>
    %7 = arith.truncf %6 : vector<128x128xf32> to vector<128x128xbf16>
    %c0_5 = arith.constant 0 : index
    %c0_6 = arith.constant 0 : index
    %8 = vector.load %arg2[%c0_5, %c0_6] : memref<128x128xbf16, #tpu.memory_space<vmem>>, vector<128x128xbf16>
    %9 = tpu.concatenate %7, %8 in 1 : vector<128x128xbf16>, vector<128x128xbf16> -> vector<128x256xbf16>
    %c0_7 = arith.constant 0 : index
    %c0_8 = arith.constant 0 : index
    %10 = vector.load %arg3[%c0_7, %c0_8] : memref<256x128xbf16, #tpu.memory_space<vmem>>, vector<256x128xbf16>
    %cst_9 = arith.constant dense<0.000000e+00> : vector<128x128xf32>
    %11 = tpu.matmul %9, %10, %cst_9 {dimension_numbers = #tpu.dot_dimension_numbers<[1], [0], [0], [1], [0, 0, 1, 1], [], []>} : vector<128x256xbf16>, vector<256x128xbf16>, vector<128x128xf32> -> vector<128x128xf32>
    %c0_10 = arith.constant 0 : index
    %c0_11 = arith.constant 0 : index
    %12 = vector.load %arg4[%c0_10, %c0_11] : memref<1x128xf32, #tpu.memory_space<vmem>>, vector<1x128xf32>
    %13 = vector.broadcast %12 : vector<1x128xf32> to vector<128x128xf32>
    %14 = arith.addf %11, %13 : vector<128x128xf32>
    %cst_12 = arith.constant 0.000000e+00 : f32
    %15 = vector.broadcast %cst_12 : f32 to vector<128x128xf32>
    %16 = arith.maximumf %14, %15 : vector<128x128xf32>
    %17 = arith.truncf %16 : vector<128x128xf32> to vector<128x128xbf16>
    %cst_13 = arith.constant dense<0.000000e+00> : vector<128x128xf32>
    %18 = tpu.matmul %1, %17, %cst_13 {dimension_numbers = #tpu.dot_dimension_numbers<[1], [0], [0], [1], [0, 0, 1, 1], [], []>} : vector<128x128xbf16>, vector<128x128xbf16>, vector<128x128xf32> -> vector<128x128xf32>
    %19 = vector.broadcast %2 : vector<128x1xf32> to vector<128x128xf32>
    %20 = arith.mulf %18, %19 : vector<128x128xf32>
    %21 = arith.truncf %20 : vector<128x128xf32> to vector<128x128xbf16>
    %22 = tpu.concatenate %21, %17 in 1 : vector<128x128xbf16>, vector<128x128xbf16> -> vector<128x256xbf16>
    %c0_14 = arith.constant 0 : index
    %c0_15 = arith.constant 0 : index
    %23 = vector.load %arg5[%c0_14, %c0_15] : memref<256x128xbf16, #tpu.memory_space<vmem>>, vector<256x128xbf16>
    %cst_16 = arith.constant dense<0.000000e+00> : vector<128x128xf32>
    %24 = tpu.matmul %22, %23, %cst_16 {dimension_numbers = #tpu.dot_dimension_numbers<[1], [0], [0], [1], [0, 0, 1, 1], [], []>} : vector<128x256xbf16>, vector<256x128xbf16>, vector<128x128xf32> -> vector<128x128xf32>
    %c0_17 = arith.constant 0 : index
    %c0_18 = arith.constant 0 : index
    %25 = vector.load %arg6[%c0_17, %c0_18] : memref<1x128xf32, #tpu.memory_space<vmem>>, vector<1x128xf32>
    %26 = vector.broadcast %25 : vector<1x128xf32> to vector<128x128xf32>
    %27 = arith.addf %24, %26 : vector<128x128xf32>
    %cst_19 = arith.constant 0.000000e+00 : f32
    %28 = vector.broadcast %cst_19 : f32 to vector<128x128xf32>
    %29 = arith.maximumf %27, %28 : vector<128x128xf32>
    %30 = arith.truncf %29 : vector<128x128xf32> to vector<128x128xbf16>
    %c0_20 = arith.constant 0 : index
    %c0_21 = arith.constant 0 : index
    %31 = vector.load %arg7[%c0_20, %c0_21] : memref<128x128xbf16, #tpu.memory_space<vmem>>, vector<128x128xbf16>
    tpu.vector_store %arg7[%c0_20, %c0_21], %30 {strides = array<i32>} : memref<128x128xbf16, #tpu.memory_space<vmem>>, vector<128x128xbf16>,
    return
  }
}

</mosaic_0001>

<bundles_post_ra>
// kernel: tpu_custom_call.1
= control target key start
LH: loop header
LB: loop body
LE: loop exit
PB: predicated region body
PF: predicated region fallthrough
CT: control target
= control target key end

     0   :  { %12 = vsyncpa [#allocation3], 0  ;;  %s1963_s0 = inlined_call_operand.hbm [shape: s8[128,128], index: 0, kind: input, shape index: {}]   ;;  %s1964_s1 = inlined_call_operand.vmem [shape: f32[128,1], index: 1, kind: input, shape index: {}]   ;;  %s1965_s2 = inlined_call_operand.hbm [shape: bf16[128,128], index: 2, kind: input, shape index: {}]   ;;  %s1966_s3 = inlined_call_operand.vmem [shape: bf16[256,128], index: 3, kind: input, shape index: {}]   ;;  %s1967_s4 = inlined_call_operand.vmem [shape: f32[1,128], index: 4, kind: input, shape index: {}]   ;;  %s1968_s5 = inlined_call_operand.hbm [shape: bf16[256,128], index: 5, kind: input, shape index: {}]   ;;  %s1969_s6 = inlined_call_operand.vmem [shape: f32[1,128], index: 6, kind: input, shape index: {}]   ;;  %s1970_s7 = inlined_call_operand.hbm [shape: bf16[128,128], index: 7, kind: output, shape index: {}]  }
   0x1   :  { %13 = vsyncpa [#allocation6], 0 }
   0x2   :  { %14 = vsyncpa [#allocation4], 0  ;;  %s1567_s24 = smov [#allocation5]  }
   0x3   :  { %s34_s25 = sshll.u32 %s1567_s24, 4  ;;  %s35_s25 = int_to_ptr.vmem [resolvable:$true] %s34_s25 }
   0x4   :  { %s1489_s26 = scalar_lea.vmem %s35_s25, 1024  ;;  %p1494_p1 = scmp.lt.s32.totalorder %s35_s25, %s35_s25 }
   0x5   :  { %p1490_p0 = scmp.ne.s32.totalorder %s35_s25, %s1489_s26  ;;  %p1495_p2 = scmp.lt.s32.totalorder %s1489_s26, %s1489_s26 }
   0x7   :  { %p1496_p3 = por %p1495_p2, %p1494_p1 }
   0x9   :  { %p1497_p4 = pnand %p1496_p3, %p1490_p0 }
   0xb   :  { %1500 = shalt.err (!%p1497_p4)
}
   0xc   :  { %s1568_s27 = smov 64   ;;  %s1569_s28 = smov 4  }
   0xd   :  { %40 = dma.hbm_to_vmem [thread:$0]  %s1965_s2, 1024, %s35_s25, [#allocation6], %s1568_s27, %s1568_s27, %s1569_s28  }
   0xe   :  { %s1570_s8 = smov [#allocation2]  }
   0xf   :  { %s20_s9 = sshll.u32 %s1570_s8, 4  ;;  %s21_s9 = int_to_ptr.vmem [resolvable:$true] %s20_s9 }
  0x10   :  { %s1509_s10 = scalar_lea.vmem %s21_s9, 512  ;;  %p1514_p6 = scmp.lt.s32.totalorder %s21_s9, %s21_s9 }
  0x11   :  { %p1510_p5 = scmp.ne.s32.totalorder %s21_s9, %s1509_s10  ;;  %p1515_p7 = scmp.lt.s32.totalorder %s1509_s10, %s1509_s10 }
  0x13   :  { %p1516_p8 = por %p1515_p7, %p1514_p6 }
  0x15   :  { %p1517_p9 = pnand %p1516_p8, %p1510_p5 }
  0x17   :  { %1520 = shalt.err (!%p1517_p9)
}
  0x18   :  { %s1571_s11 = smov 128   ;;  %s1572_s12 = smov 8  }
  0x19   :  { %26 = dma.hbm_to_vmem [thread:$0]  %s1963_s0, 512, %s21_s9, [#allocation3], %s1571_s11, %s1571_s11, %s1572_s12  }
  0x1a   :  { %s1573_s15 = smov [#allocation7]  }
  0x1b   :  { %s50_s16 = sshll.u32 %s1573_s15, 4  ;;  %s51_s16 = int_to_ptr.vmem [resolvable:$true] %s50_s16 }
  0x1c   :  { %s1529_s2 = scalar_lea.vmem %s51_s16, 2048  ;;  %p1534_p11 = scmp.lt.s32.totalorder %s51_s16, %s51_s16 }
  0x1d   :  { %p1530_p10 = scmp.ne.s32.totalorder %s51_s16, %s1529_s2  ;;  %p1535_p12 = scmp.lt.s32.totalorder %s1529_s2, %s1529_s2 }
  0x1f   :  { %p1536_p13 = por %p1535_p12, %p1534_p11 }
  0x21   :  { %p1537_p0 = pnand %p1536_p13, %p1530_p10 }
  0x23   :  { %1540 = shalt.err (!%p1537_p0)
}
  0x24   :  { %56 = dma.hbm_to_vmem [thread:$0]  %s1968_s5, 2048, %s51_s16, [#allocation6], %s1568_s27, %s1568_s27, %s1569_s28  }
  0x25   :  { %1561 = dma.done.wait [#allocation3], 512  }
  0x26   :  { %1562 = vsyncadd [#allocation3], 4294966784 }
  0x27   :  { %1563 = dma.done.wait [#allocation6], 3072  }
  0x28   :  { %1564 = vsyncadd [#allocation6], 4294964224  ;;  %v1574_v0 = vmov 0   ;;  %v1631_v1 = vld [vmem:[#allocation5 + $0x38] sm:$0xff]   ;;  %v1633_v2 = vld [vmem:[#allocation5 + $0x30] sm:$0xff]  }
  0x29   :  { %1439 = vset.pattern.permute.xlu0 %v1574_v0  ;;  %1440 = vset.pattern.permute.xlu1 %v1574_v0  ;;  %v1638_v3 = vld [vmem:[#allocation5 + $0x28] sm:$0xff]   ;;  %v1642_v4 = vld [vmem:[#allocation5 + $0x20] sm:$0xff]   ;;  %v83_v8 = vld [vmem:[%s1964_s1 + $0x10] sm:$0xff] }
  0x2a   :  { %1366 = vmatprep.subr.bf16.mxu1 %v1631_v1  ;;  %v1644_v5 = vld [vmem:[#allocation2] sm:$0xff]  ;;  %v82_v9 = vld [vmem:[%s1964_s1 + $0x8] sm:$0xff]  ;;  %v1658_v10 = vld [vmem:[#allocation5 + $0x18] sm:$0xff]   ;;  %270 = vperm.xlu1 %1440, %v83_v8  }
  0x2b   :  { %1367 = vmatpush3.bf16.msra.mxu1 %v1631_v1  ;;  %v73_v6 = vunpack.c.l.s8.bf16 %v1644_v5  ;;  %v81_v7 = vld [vmem:[%s1964_s1] sm:$0xff]  ;;  %v84_v11 = vld [vmem:[%s1964_s1 + $0x18] sm:$0xff]  ;;  %v1668_v13 = vld [vmem:[#allocation5 + $0x10] sm:$0xff]   ;;  %v74_v27 = vunpack.c.h.s8.bf16 %v1644_v5 }
  0x2c   :  { %1368 = vmatprep.subr.bf16.mxu1 %v1633_v2  ;;  %260 = vperm.xlu0 %1439, %v81_v7   ;;  %v85_v12 = vld [vmem:[%s1964_s1 + $0x20] sm:$0xff]  ;;  %v86_v14 = vld [vmem:[%s1964_s1 + $0x28] sm:$0xff]  ;;  %v87_v15 = vld [vmem:[%s1964_s1 + $0x30] sm:$0xff] }
  0x2d   :  { %1382 = vmatprep.mubr.bf16.mxu1 %v73_v6  ;;  %1414 = vmatprep.mubr.bf16.mxu0 %v73_v6  ;;  %v1678_v16 = vld [vmem:[#allocation5 + $0x8] sm:$0xff]   ;;  %v88_v17 = vld [vmem:[%s1964_s1 + $0x38] sm:$0xff]  ;;  %v1683_v18 = vld [vmem:[#allocation5] sm:$0xff]  }
  0x2e   :  { %275 = vperm.xlu1 %1440, %v84_v11   ;;  %v89_v19 = vld [vmem:[%s1964_s1 + $0x40] sm:$0xff]  ;;  %v91_v20 = vld [vmem:[%s1964_s1 + $0x50] sm:$0xff]  ;;  %v90_v21 = vld [vmem:[%s1964_s1 + $0x48] sm:$0xff] }
  0x2f   :  { %1369 = vmatpush3.bf16.msra.mxu1 %v1633_v2  ;;  %v1696_v22 = vld [vmem:[#allocation2 + $0x8] sm:$0xff]  ;;  %v1449_v23 = vld [vmem:[%s1966_s3 + $0x78] sm:$0xff]   ;;  %v93_v24 = vld [vmem:[%s1964_s1 + $0x60] sm:$0xff] }
  0x30   :  { %1370 = vmatprep.subr.bf16.mxu1 %v1638_v3  ;;  %265 = vperm.xlu0 %1439, %v82_v9   ;;  %v92_v25 = vld [vmem:[%s1964_s1 + $0x58] sm:$0xff]  ;;  %v1451_v28 = vld [vmem:[%s1966_s3 + $0x70] sm:$0xff]   ;;  %v75_v29 = vunpack.c.l.s8.bf16 %v1696_v22  ;;  %v94_v30 = vld [vmem:[%s1964_s1 + $0x68] sm:$0xff]  ;;  %v76_v37 = vunpack.c.h.s8.bf16 %v1696_v22 }
  0x31   :  { %v1450_v26 = vld [vmem:[%s1966_s3 + $0x38] sm:$0xff]   ;;  %v95_v31 = vld [vmem:[%s1964_s1 + $0x70] sm:$0xff]  ;;  %v1453_v34 = vld [vmem:[%s1966_s3 + $0x68] sm:$0xff]  }
  0x32   :  { %285 = vperm.xlu1 %1440, %v86_v14   ;;  %v1452_v32 = vld [vmem:[%s1966_s3 + $0x30] sm:$0xff]   ;;  %v96_v35 = vld [vmem:[%s1964_s1 + $0x78] sm:$0xff]  ;;  %v1454_v36 = vld [vmem:[%s1966_s3 + $0x28] sm:$0xff]  }
  0x33   :  { %1371 = vmatpush3.bf16.msra.mxu1 %v1638_v3  ;;  %v1729_v33 = vld [vmem:[#allocation2 + $0x10] sm:$0xff]  ;;  %v1455_v39 = vld [vmem:[%s1966_s3 + $0x60] sm:$0xff]   ;;  %v1754_v41 = vld [vmem:[#allocation2 + $0x18] sm:$0xff] }
  0x34   :  { %1372 = vmatprep.subr.bf16.mxu1 %v1642_v4  ;;  %280 = vperm.xlu0 %1439, %v85_v12   ;;  %v77_v38 = vunpack.c.l.s8.bf16 %v1729_v33  ;;  %v1456_v40 = vld [vmem:[%s1966_s3 + $0x20] sm:$0xff]   ;;  %v1457_v42 = vld [vmem:[%s1966_s3 + $0x58] sm:$0xff]   ;;  %v1973_v43 = vunpack.c.h.s8.bf16 %v1729_v33  ;;  %v1972_v44 = vunpack.c.l.s8.bf16 %v1754_v41  ;;  %v1459_v46 = vld [vmem:[%s1966_s3 + $0x50] sm:$0xff]   ;;  %v1971_v48 = vunpack.c.h.s8.bf16 %v1754_v41 }
  0x35   :  { %v1458_v45 = vld [vmem:[%s1966_s3 + $0x18] sm:$0xff]   ;;  %v1460_v47 = vld [vmem:[%s1966_s3 + $0x10] sm:$0xff]   ;;  %v1461_v49 = vld [vmem:[%s1966_s3 + $0x48] sm:$0xff]  }
  0x36   :  { %295 = vperm.xlu1 %1440, %v88_v17   ;;  %v1462_v50 = vld [vmem:[%s1966_s3 + $0x8] sm:$0xff]   ;;  %v1463_v51 = vld [vmem:[%s1966_s3 + $0x40] sm:$0xff]   ;;  %v1476_v22 = vld [vmem:[#allocation7 + $0x10] sm:$0xff]  }
  0x37   :  { %1373 = vmatpush3.bf16.msra.mxu1 %v1642_v4  ;;  %v1464_v52 = vld [vmem:[%s1966_s3] sm:$0xff]  }
  0x38   :  { %1374 = vmatprep.subr.bf16.mxu1 %v1658_v10  ;;  %290 = vperm.xlu0 %1439, %v87_v15   ;;  %v1472_v5 = vld [vmem:[#allocation7 + $0x20] sm:$0xff]  }
  0x3a   :  { %305 = vperm.xlu1 %1440, %v90_v21  }
  0x3b   :  { %1375 = vmatpush3.bf16.msra.mxu1 %v1658_v10 }
  0x3c   :  { %1376 = vmatprep.subr.bf16.mxu1 %v1668_v13  ;;  %300 = vperm.xlu0 %1439, %v89_v19  }
  0x3e   :  { %315 = vperm.xlu1 %1440, %v92_v25  }
  0x3f   :  { %1377 = vmatpush3.bf16.msra.mxu1 %v1668_v13 }
  0x40   :  { %1378 = vmatprep.subr.bf16.mxu1 %v1678_v16  ;;  %310 = vperm.xlu0 %1439, %v91_v20  }
  0x42   :  { %325 = vperm.xlu1 %1440, %v94_v30  }
  0x43   :  { %1379 = vmatpush3.bf16.msra.mxu1 %v1678_v16 }
  0x44   :  { %1380 = vmatprep.subr.bf16.mxu1 %v1683_v18  ;;  %320 = vperm.xlu0 %1439, %v93_v24  }
  0x46   :  { %335 = vperm.xlu1 %1440, %v96_v35  }
  0x47   :  { %1381 = vmatpush3.bf16.msra.mxu1 %v1683_v18 }
  0x48   :  { %1222 = vmatprep.subr.bf16.mxu1 %v1449_v23  ;;  %330 = vperm.xlu0 %1439, %v95_v31  }
  0x4a   :  { %1383 = vmatmul.mubr.bf16.vlgmr.msra.gmra.mxu1 %v74_v27 }
  0x4b   :  { %1386 = vmatprep.mubr.bf16.mxu1 %v75_v29  ;;  %1223 = vmatpush3.bf16.msra.mxu1 %v1450_v26 }
  0x4c   :  { %1224 = vmatprep.subr.bf16.mxu1 %v1451_v28 }
  0x4f   :  { %1225 = vmatpush3.bf16.msra.mxu1 %v1452_v32 }
  0x50   :  { %1226 = vmatprep.subr.bf16.mxu1 %v1453_v34 }
  0x52   :  { %1387 = vmatmul.mubr.bf16.gmra.mxu1 %v76_v37 }
  0x53   :  { %1390 = vmatprep.mubr.bf16.mxu1 %v77_v38  ;;  %1227 = vmatpush3.bf16.msra.mxu1 %v1454_v36 }
  0x54   :  { %1228 = vmatprep.subr.bf16.mxu1 %v1455_v39 }
  0x57   :  { %1229 = vmatpush3.bf16.msra.mxu1 %v1456_v40 }
  0x58   :  { %1230 = vmatprep.subr.bf16.mxu1 %v1457_v42 }
  0x5a   :  { %1391 = vmatmul.mubr.bf16.gmra.mxu1 %v1973_v43 }
  0x5b   :  { %1394 = vmatprep.mubr.bf16.mxu1 %v1972_v44  ;;  %1231 = vmatpush3.bf16.msra.mxu1 %v1458_v45 }
  0x5c   :  { %1232 = vmatprep.subr.bf16.mxu1 %v1459_v46 }
  0x5f   :  { %1233 = vmatpush3.bf16.msra.mxu1 %v1460_v47 }
  0x60   :  { %1234 = vmatprep.subr.bf16.mxu1 %v1461_v49 }
  0x62   :  { %1395 = vmatmul.mubr.bf16.gmra.mxu1 %v1971_v48 }
  0x63   :  { %529 = vmatprep.mubr.bf16.mxu1 %v1683_v18  ;;  %1235 = vmatpush3.bf16.msra.mxu1 %v1462_v50 }
  0x64   :  { %1236 = vmatprep.subr.bf16.mxu1 %v1463_v51 }
  0x67   :  { %1237 = vmatpush3.bf16.msra.mxu1 %v1464_v52 }
  0xa5   :  { %v1792_v57 = vpop.permute.xlu1 %270 }
  0xa7   :  { %v1790_v53 = vpop.permute.xlu0 %260 }
  0xa9   :  { %v1798_v6 = vpop.permute.xlu1 %275 }
  0xab   :  { %v1794_v58 = vpop.permute.xlu0 %265 }
  0xad   :  { %v1803_v14 = vpop.permute.xlu1 %285 }
  0xaf   :  { %v1807_v17 = vpop.permute.xlu0 %280 }
  0xb1   :  { %v1810_v21 = vpop.permute.xlu1 %295 }
  0xb3   :  { %v1814_v24 = vpop.permute.xlu0 %290 }
  0xb5   :  { %v1817_v30 = vpop.permute.xlu1 %305 }
  0xb7   :  { %v1821_v32 = vpop.permute.xlu0 %300 }
  0xb9   :  { %v1824_v39 = vpop.permute.xlu1 %315 }
  0xbb   :  { %v1828_v42 = vpop.permute.xlu0 %310 }
  0xbd   :  { %v1831_v49 = vpop.permute.xlu1 %325 }
  0xbf   :  { %v1835_v51 = vpop.permute.xlu0 %320 }
 0x10a   :  { %v1384_v54 = vpop.f32.mrf.mxu1 }
 0x10b   :  { %v340_v9 = vmul.f32 %v1384_v54, %v1792_v57  ;;  %v1838_v54 = vpop.permute.xlu1 %335 }
 0x10c   :  { %v195_v55 = vpop.f32.mrf.mxu1 }
 0x10d   :  { %v338_v60 = vmul.f32 %v1790_v53, %v195_v55 }
 0x10e   :  { %v1385_v56 = vpop.f32.mrf.mxu1 }
 0x10f   :  { %v341_v7 = vmul.f32 %v1385_v56, %v1798_v6  ;;  %v1842_v56 = vpop.permute.xlu0 %330 }
 0x110   :  { %v198_v59 = vpop.f32.mrf.mxu1 }
 0x111   :  { %v339_v61 = vmul.f32 %v1794_v58, %v198_v59  ;;  %v355_v11 = vpack.c.bf16 %v341_v7, %v340_v9 }
 0x112   :  { %v1388_v62 = vpop.f32.mrf.mxu1 }
 0x113   :  { %v354_v63 = vpack.c.bf16 %v339_v61, %v338_v60 }
 0x114   :  { %v211_v0 = vpop.f32.mrf.mxu1 }
 0x115   :  { %530 = vmatmul.mubr.bf16.vlgmr.msra.gmra.mxu1 %v354_v63  ;;  %v342_v19 = vmul.f32 %v1807_v17, %v211_v0  ;;  %v1848_v63 = vld [vmem:[%s1967_s4] ss:$0 sm:$0xff] }
 0x116   :  { %537 = vmatprep.mubr.bf16.mxu1 %v1678_v16  ;;  %v1389_v8 = vpop.f32.mrf.mxu1 }
 0x117   :  { %v345_v23 = vmul.f32 %v1389_v8, %v1810_v21 }
 0x118   :  { %v214_v12 = vpop.f32.mrf.mxu1 }
 0x119   :  { %v343_v15 = vmul.f32 %v1803_v14, %v214_v12 }
 0x11a   :  { %v1392_v18 = vpop.f32.mrf.mxu1 }
 0x11b   :  { %v356_v16 = vpack.c.bf16 %v343_v15, %v342_v19 }
 0x11c   :  { %v227_v20 = vpop.f32.mrf.mxu1 }
 0x11d   :  { %538 = vmatmul.mubr.bf16.gmra.mxu1 %v355_v11 }
 0x11e   :  { %545 = vmatprep.mubr.bf16.mxu1 %v1668_v13  ;;  %v1393_v25 = vpop.f32.mrf.mxu1  ;;  %v344_v13 = vmul.f32 %v1388_v62, %v1814_v24 }
 0x11f   :  { %v349_v40 = vmul.f32 %v1393_v25, %v1824_v39 }
 0x120   :  { %v357_v26 = vpack.c.bf16 %v345_v23, %v344_v13  ;;  %v230_v28 = vpop.f32.mrf.mxu1 }
 0x121   :  { %v347_v31 = vmul.f32 %v1817_v30, %v230_v28 }
 0x122   :  { %v1396_v34 = vpop.f32.mrf.mxu1 }
 0x123   :  { %v352_v59 = vmul.f32 %v1396_v34, %v1842_v56 }
 0x124   :  { %v243_v36 = vpop.f32.mrf.mxu1 }
 0x125   :  { %546 = vmatmul.mubr.bf16.gmra.mxu1 %v356_v16 }
 0x126   :  { %553 = vmatprep.mubr.bf16.mxu1 %v1658_v10  ;;  %v346_v10 = vmul.f32 %v1821_v32, %v227_v20  ;;  %v1397_v45 = vpop.f32.mrf.mxu1 }
 0x127   :  { %v353_v55 = vmul.f32 %v1397_v45, %v1838_v54 }
 0x128   :  { %v358_v35 = vpack.c.bf16 %v347_v31, %v346_v10  ;;  %v246_v47 = vpop.f32.mrf.mxu1 }
 0x129   :  { %v351_v50 = vmul.f32 %v1831_v49, %v246_v47  ;;  %v361_v60 = vpack.c.bf16 %v353_v55, %v352_v59 }
 0x12d   :  { %554 = vmatmul.mubr.bf16.gmra.mxu1 %v357_v26 }
 0x12e   :  { %561 = vmatprep.mubr.bf16.mxu1 %v1642_v4  ;;  %v348_v4 = vmul.f32 %v1392_v18, %v1828_v42 }
 0x130   :  { %v359_v46 = vpack.c.bf16 %v349_v40, %v348_v4 }
 0x135   :  { %562 = vmatmul.mubr.bf16.gmra.mxu1 %v358_v35 }
 0x136   :  { %569 = vmatprep.mubr.bf16.mxu1 %v1638_v3  ;;  %v350_v3 = vmul.f32 %v1835_v51, %v243_v36 }
 0x138   :  { %v360_v52 = vpack.c.bf16 %v351_v50, %v350_v3 }
 0x13d   :  { %570 = vmatmul.mubr.bf16.gmra.mxu1 %v359_v46 }
 0x13e   :  { %577 = vmatprep.mubr.bf16.mxu1 %v1633_v2 }
 0x145   :  { %578 = vmatmul.mubr.bf16.gmra.mxu1 %v360_v52 }
 0x146   :  { %585 = vmatprep.mubr.bf16.mxu1 %v1631_v1 }
 0x14d   :  { %586 = vmatmul.mubr.bf16.gmra.mxu1 %v361_v60 }
 0x1d5   :  { %v1238_v2 = vpop.f32.mrf.mxu1 }
 0x1d7   :  { %v1239_v61 = vpop.f32.mrf.mxu1 }
 0x1d8   :  { %v1240_v62 = vadd.f32 %v1239_v61, %v1238_v2 }
 0x1d9   :  { %v1241_v0 = vpop.f32.mrf.mxu1 }
 0x1da   :  { %v532_v1 = vadd.f32 %v1240_v62, %v1848_v63 }
 0x1db   :  { %v1242_v7 = vpop.f32.mrf.mxu1 }
 0x1dc   :  { %v1243_v8 = vadd.f32 %v1242_v7, %v1241_v0  ;;  %v594_v15 = vmax.f32 %v532_v1, 0.0 }
 0x1dd   :  { %v1244_v9 = vpop.f32.mrf.mxu1 }
 0x1de   :  { %v535_v11 = vadd.f32 %v1243_v8, %v1848_v63 }
 0x1df   :  { %v1245_v12 = vpop.f32.mrf.mxu1 }
 0x1e0   :  { %v595_v18 = vmax.f32 %v535_v11, 0.0  ;;  %v1246_v19 = vadd.f32 %v1245_v12, %v1244_v9 }
 0x1e1   :  { %v1247_v16 = vpop.f32.mrf.mxu1 }
 0x1e2   :  { %v1852_v20 = vpack.c.bf16 %v595_v18, %v594_v15  ;;  %v540_v25 = vadd.f32 %v1246_v19, %v1848_v63 }
 0x1e3   :  { %v1248_v23 = vpop.f32.mrf.mxu1 }
 0x1e4   :  { %v1249_v13 = vadd.f32 %v1248_v23, %v1247_v16  ;;  %v596_v34 = vmax.f32 %v540_v25, 0.0 }
 0x1e5   :  { %v1250_v26 = vpop.f32.mrf.mxu1 }
 0x1e6   :  { %v543_v28 = vadd.f32 %v1249_v13, %v1848_v63 }
 0x1e7   :  { %v1251_v31 = vpop.f32.mrf.mxu1 }
 0x1e8   :  { %v597_v10 = vmax.f32 %v543_v28, 0.0 }
 0x1e9   :  { %v1253_v35 = vpop.f32.mrf.mxu1 }
 0x1ea   :  { %v1856_v36 = vpack.c.bf16 %v597_v10, %v596_v34 }
 0x1eb   :  { %v1254_v40 = vpop.f32.mrf.mxu1 }
 0x1ed   :  { %v1256_v45 = vpop.f32.mrf.mxu1 }
 0x1ef   :  { %v1257_v4 = vpop.f32.mrf.mxu1 }
 0x1f1   :  { %v1259_v46 = vpop.f32.mrf.mxu1 }
 0x1f3   :  { %v1260_v47 = vpop.f32.mrf.mxu1 }
 0x1f5   :  { %v1262_v50 = vpop.f32.mrf.mxu1 }
 0x1f7   :  { %v1263_v3 = vpop.f32.mrf.mxu1 }
 0x1f9   :  { %v1265_v52 = vpop.f32.mrf.mxu1 }
 0x1fb   :  { %v1266_v55 = vpop.f32.mrf.mxu1 }
 0x1fc   :  { %v1267_v48 = vadd.f32 %v1266_v55, %v1265_v52  ;;  %v1258_v52 = vadd.f32 %v1257_v4, %v1256_v45 }
 0x1fd   :  { %v1268_v59 = vpop.f32.mrf.mxu1 }
 0x1ff   :  { %v1269_v60 = vpop.f32.mrf.mxu1 }
 0x200   :  { %v1270_v28 = vadd.f32 %v1269_v60, %v1268_v59 }
 0x201   :  { %v1271_v2 = vpop.f32.mrf.mxu1 }
 0x203   :  { %v1272_v61 = vpop.f32.mrf.mxu1 }
 0x204   :  { %v1273_v16 = vadd.f32 %v1272_v61, %v1271_v2 }
 0x205   :  { %v1274_v62 = vpop.f32.mrf.mxu1 }
 0x206   :  { %v575_v44 = vadd.f32 %v1273_v16, %v1848_v63  ;;  %v1467_v16 = vld [vmem:[#allocation7 + $0x70] sm:$0xff]  }
 0x207   :  { %v1275_v0 = vpop.f32.mrf.mxu1 }
 0x208   :  { %v1276_v18 = vadd.f32 %v1275_v0, %v1274_v62  ;;  %v572_v62 = vadd.f32 %v1270_v28, %v1848_v63  ;;  %v1261_v0 = vadd.f32 %v1260_v47, %v1259_v46  ;;  %v605_v59 = vmax.f32 %v575_v44, 0.0  ;;  %v1471_v28 = vld [vmem:[#allocation7 + $0x60] sm:$0xff]  }
 0x209   :  { %v1277_v7 = vpop.f32.mrf.mxu1  ;;  %v1252_v44 = vadd.f32 %v1251_v31, %v1250_v26 }
 0x20a   :  { %v580_v34 = vadd.f32 %v1276_v18, %v1848_v63 }
 0x20b   :  { %v1278_v1 = vpop.f32.mrf.mxu1 }
 0x20c   :  { %v1279_v11 = vadd.f32 %v1278_v1, %v1277_v7  ;;  %v606_v2 = vmax.f32 %v580_v34, 0.0  ;;  %v1475_v34 = vld [vmem:[#allocation7 + $0x50] sm:$0xff]  }
 0x20d   :  { %v1280_v8 = vpop.f32.mrf.mxu1 }
 0x20e   :  { %v583_v23 = vadd.f32 %v1279_v11, %v1848_v63  ;;  %v604_v11 = vmax.f32 %v572_v62, 0.0  ;;  %v1480_v62 = vld [vmem:[#allocation7] sm:$0xff]  }
 0x20f   :  { %v1281_v9 = vpop.f32.mrf.mxu1 }
 0x210   :  { %v1282_v12 = vadd.f32 %v1281_v9, %v1280_v8  ;;  %v607_v43 = vmax.f32 %v583_v23, 0.0  ;;  %v1264_v8 = vadd.f32 %v1263_v3, %v1262_v50  ;;  %v567_v9 = vadd.f32 %v1267_v48, %v1848_v63  ;;  %v1468_v23 = vld [vmem:[#allocation7 + $0x30] sm:$0xff]  }
 0x211   :  { %v1283_v15 = vpop.f32.mrf.mxu1  ;;  %v1255_v50 = vadd.f32 %v1254_v40, %v1253_v35  ;;  %v559_v3 = vadd.f32 %v1261_v0, %v1848_v63  ;;  %v1874_v46 = vpack.c.bf16 %v605_v59, %v604_v11  ;;  %v548_v35 = vadd.f32 %v1252_v44, %v1848_v63 }
 0x212   :  { %v588_v25 = vadd.f32 %v1282_v12, %v1848_v63  ;;  %v1868_v60 = vpack.c.bf16 %v607_v43, %v606_v2  ;;  %v564_v55 = vadd.f32 %v1264_v8, %v1848_v63  ;;  %v603_v12 = vmax.f32 %v567_v9, 0.0  ;;  %v1479_v8 = vld [vmem:[#allocation7 + $0x40] sm:$0xff]  }
 0x213   :  { %v1284_v19 = vpop.f32.mrf.mxu1  ;;  %v556_v43 = vadd.f32 %v1258_v52, %v1848_v63  ;;  %v551_v45 = vadd.f32 %v1255_v50, %v1848_v63  ;;  %v601_v4 = vmax.f32 %v559_v3, 0.0  ;;  %v598_v26 = vmax.f32 %v548_v35, 0.0 }
 0x214   :  { %v1285_v13 = vadd.f32 %v1284_v19, %v1283_v15  ;;  %v608_v7 = vmax.f32 %v588_v25, 0.0  ;;  %v602_v48 = vmax.f32 %v564_v55, 0.0  ;;  %v1466_v19 = vld [vmem:[#allocation7 + $0x38] sm:$0xff]   ;;  %v1469_v25 = vld [vmem:[#allocation7 + $0x68] sm:$0xff]  }
 0x215   :  { %v600_v40 = vmax.f32 %v556_v43, 0.0  ;;  %v599_v15 = vmax.f32 %v551_v45, 0.0 }
 0x216   :  { %v591_v10 = vadd.f32 %v1285_v13, %v1848_v63  ;;  %v1880_v47 = vpack.c.bf16 %v603_v12, %v602_v48  ;;  %v1465_v63 = vld [vmem:[#allocation7 + $0x78] sm:$0xff]   ;;  %v1470_v13 = vld [vmem:[#allocation7 + $0x28] sm:$0xff]  }
 0x217   :  { %v1885_v18 = vpack.c.bf16 %v601_v4, %v600_v40  ;;  %v1889_v31 = vpack.c.bf16 %v599_v15, %v598_v26 }
 0x218   :  { %v609_v1 = vmax.f32 %v591_v10, 0.0  ;;  %v1974_v10 = vunpack.c.h.s8.bf16 %v1729_v33 }
 0x21a   :  { %v1864_v61 = vpack.c.bf16 %v609_v1, %v608_v7  ;;  %v1975_v7 = vunpack.c.l.s8.bf16 %v1754_v41  ;;  %v1478_v1 = vld [vmem:[#allocation7 + $0x8] sm:$0xff]  }
 0x21c   :  { %1398 = vmatprep.subr.bf16.mxu0 %v1864_v61 }
 0x21d   :  { %1399 = vmatpush3.bf16.msra.mxu0 %v1864_v61 }
 0x21e   :  { %1400 = vmatprep.subr.bf16.mxu0 %v1868_v60 }
 0x221   :  { %1401 = vmatpush3.bf16.msra.mxu0 %v1868_v60 }
 0x222   :  { %1402 = vmatprep.subr.bf16.mxu0 %v1874_v46 }
 0x225   :  { %1403 = vmatpush3.bf16.msra.mxu0 %v1874_v46 }
 0x226   :  { %1404 = vmatprep.subr.bf16.mxu0 %v1880_v47 }
 0x229   :  { %1405 = vmatpush3.bf16.msra.mxu0 %v1880_v47 }
 0x22a   :  { %1406 = vmatprep.subr.bf16.mxu0 %v1885_v18 }
 0x22d   :  { %1407 = vmatpush3.bf16.msra.mxu0 %v1885_v18 }
 0x22e   :  { %1408 = vmatprep.subr.bf16.mxu0 %v1889_v31 }
 0x231   :  { %1409 = vmatpush3.bf16.msra.mxu0 %v1889_v31 }
 0x232   :  { %1410 = vmatprep.subr.bf16.mxu0 %v1856_v36 }
 0x235   :  { %1411 = vmatpush3.bf16.msra.mxu0 %v1856_v36 }
 0x236   :  { %1412 = vmatprep.subr.bf16.mxu0 %v1852_v20 }
 0x239   :  { %1413 = vmatpush3.bf16.msra.mxu0 %v1852_v20 }
 0x23a   :  { %1302 = vmatprep.subr.bf16.mxu0 %v1465_v63 }
 0x23c   :  { %1415 = vmatmul.mubr.bf16.vlgmr.msra.gmra.mxu0 %v74_v27  ;;  %v1473_v27 = vld [vmem:[#allocation7 + $0x58] sm:$0xff]  }
 0x23d   :  { %1418 = vmatprep.mubr.bf16.mxu0 %v75_v29  ;;  %1303 = vmatpush3.bf16.msra.mxu0 %v1466_v19  ;;  %v1474_v29 = vld [vmem:[#allocation7 + $0x18] sm:$0xff]  }
 0x23e   :  { %1304 = vmatprep.subr.bf16.mxu0 %v1467_v16 }
 0x241   :  { %1305 = vmatpush3.bf16.msra.mxu0 %v1468_v23 }
 0x242   :  { %1306 = vmatprep.subr.bf16.mxu0 %v1469_v25 }
 0x244   :  { %1419 = vmatmul.mubr.bf16.gmra.mxu0 %v76_v37  ;;  %v1976_v37 = vunpack.c.h.s8.bf16 %v1754_v41 }
 0x245   :  { %1422 = vmatprep.mubr.bf16.mxu0 %v77_v38  ;;  %1307 = vmatpush3.bf16.msra.mxu0 %v1470_v13  ;;  %v1477_v38 = vld [vmem:[#allocation7 + $0x48] sm:$0xff]  }
 0x246   :  { %1308 = vmatprep.subr.bf16.mxu0 %v1471_v28 }
 0x249   :  { %1309 = vmatpush3.bf16.msra.mxu0 %v1472_v5 }
 0x24a   :  { %1310 = vmatprep.subr.bf16.mxu0 %v1473_v27 }
 0x24c   :  { %1423 = vmatmul.mubr.bf16.gmra.mxu0 %v1974_v10 }
 0x24d   :  { %1426 = vmatprep.mubr.bf16.mxu0 %v1975_v7  ;;  %1311 = vmatpush3.bf16.msra.mxu0 %v1474_v29 }
 0x24e   :  { %1312 = vmatprep.subr.bf16.mxu0 %v1475_v34 }
 0x251   :  { %1313 = vmatpush3.bf16.msra.mxu0 %v1476_v22 }
 0x252   :  { %1314 = vmatprep.subr.bf16.mxu0 %v1477_v38 }
 0x254   :  { %1427 = vmatmul.mubr.bf16.gmra.mxu0 %v1976_v37 }
 0x255   :  { %906 = vmatprep.mubr.bf16.mxu0 %v1852_v20  ;;  %1315 = vmatpush3.bf16.msra.mxu0 %v1478_v1 }
 0x256   :  { %1316 = vmatprep.subr.bf16.mxu0 %v1479_v8 }
 0x259   :  { %1317 = vmatpush3.bf16.msra.mxu0 %v1480_v62 }
 0x2fc   :  { %v1416_v33 = vpop.f32.mrf.mxu0 }
 0x2fd   :  { %v717_v3 = vmul.f32 %v1416_v33, %v1792_v57 }
 0x2fe   :  { %v652_v2 = vpop.f32.mrf.mxu0 }
 0x2ff   :  { %v715_v59 = vmul.f32 %v652_v2, %v1790_v53 }
 0x300   :  { %v1417_v0 = vpop.f32.mrf.mxu0 }
 0x301   :  { %v718_v20 = vmul.f32 %v1417_v0, %v1798_v6 }
 0x302   :  { %v655_v9 = vpop.f32.mrf.mxu0 }
 0x303   :  { %v716_v52 = vmul.f32 %v655_v9, %v1794_v58  ;;  %v732_v12 = vpack.c.bf16 %v718_v20, %v717_v3 }
 0x304   :  { %v1420_v41 = vpop.f32.mrf.mxu0 }
 0x305   :  { %v731_v55 = vpack.c.bf16 %v716_v52, %v715_v59  ;;  %v721_v57 = vmul.f32 %v1420_v41, %v1814_v24 }
 0x306   :  { %v668_v11 = vpop.f32.mrf.mxu0 }
 0x307   :  { %907 = vmatmul.mubr.bf16.vlgmr.msra.gmra.mxu0 %v731_v55  ;;  %v719_v58 = vmul.f32 %v668_v11, %v1807_v17 }
 0x308   :  { %914 = vmatprep.mubr.bf16.mxu0 %v1856_v36  ;;  %v1421_v50 = vpop.f32.mrf.mxu0 }
 0x309   :  { %v722_v6 = vmul.f32 %v1421_v50, %v1810_v21 }
 0x30a   :  { %v671_v44 = vpop.f32.mrf.mxu0 }
 0x30b   :  { %v720_v53 = vmul.f32 %v671_v44, %v1803_v14  ;;  %v734_v4 = vpack.c.bf16 %v722_v6, %v721_v57 }
 0x30c   :  { %v1424_v43 = vpop.f32.mrf.mxu0 }
 0x30d   :  { %v733_v48 = vpack.c.bf16 %v720_v53, %v719_v58  ;;  %v725_v24 = vmul.f32 %v1424_v43, %v1828_v42 }
 0x30e   :  { %v684_v45 = vpop.f32.mrf.mxu0 }
 0x30f   :  { %915 = vmatmul.mubr.bf16.gmra.mxu0 %v732_v12  ;;  %v723_v17 = vmul.f32 %v684_v45, %v1821_v32 }
 0x310   :  { %922 = vmatprep.mubr.bf16.mxu0 %v1889_v31  ;;  %v1425_v36 = vpop.f32.mrf.mxu0 }
 0x311   :  { %v726_v21 = vmul.f32 %v1425_v36, %v1824_v39 }
 0x312   :  { %v687_v35 = vpop.f32.mrf.mxu0 }
 0x313   :  { %v724_v14 = vmul.f32 %v687_v35, %v1817_v30  ;;  %v736_v31 = vpack.c.bf16 %v726_v21, %v725_v24 }
 0x314   :  { %v1428_v40 = vpop.f32.mrf.mxu0 }
 0x315   :  { %v735_v15 = vpack.c.bf16 %v724_v14, %v723_v17  ;;  %v729_v39 = vmul.f32 %v1428_v40, %v1842_v56 }
 0x316   :  { %v700_v26 = vpop.f32.mrf.mxu0 }
 0x317   :  { %923 = vmatmul.mubr.bf16.gmra.mxu0 %v733_v48 }
 0x318   :  { %930 = vmatprep.mubr.bf16.mxu0 %v1885_v18  ;;  %v1429_v18 = vpop.f32.mrf.mxu0 }
 0x31a   :  { %v703_v63 = vpop.f32.mrf.mxu0 }
 0x31b   :  { %v728_v30 = vmul.f32 %v703_v63, %v1831_v49 }
 0x31f   :  { %931 = vmatmul.mubr.bf16.gmra.mxu0 %v734_v4 }
 0x320   :  { %938 = vmatprep.mubr.bf16.mxu0 %v1880_v47  ;;  %v727_v47 = vmul.f32 %v700_v26, %v1835_v51 }
 0x322   :  { %v737_v32 = vpack.c.bf16 %v728_v30, %v727_v47 }
 0x327   :  { %939 = vmatmul.mubr.bf16.gmra.mxu0 %v735_v15 }
 0x328   :  { %946 = vmatprep.mubr.bf16.mxu0 %v1874_v46  ;;  %v730_v46 = vmul.f32 %v1429_v18, %v1838_v54 }
 0x32a   :  { %v738_v19 = vpack.c.bf16 %v730_v46, %v729_v39 }
 0x32f   :  { %947 = vmatmul.mubr.bf16.gmra.mxu0 %v736_v31 }
 0x330   :  { %954 = vmatprep.mubr.bf16.mxu0 %v1868_v60  ;;  %v1939_v60 = vld [vmem:[%s1969_s6] ss:$0 sm:$0xff]  ;;  %s1575_s6 = smov [#allocation8]  }
 0x331   :  { %s1072_s13 = sshll.u32 %s1575_s6, 4  ;;  %s1073_s13 = int_to_ptr.vmem [resolvable:$true] %s1072_s13 }
 0x332   :  { %s1541_s14 = scalar_lea.vmem %s1073_s13, 1024  ;;  %p1546_p2 = scmp.lt.s32.totalorder %s1073_s13, %s1073_s13 }
 0x333   :  { %p1542_p1 = scmp.ne.s32.totalorder %s1073_s13, %s1541_s14  ;;  %p1547_p3 = scmp.lt.s32.totalorder %s1541_s14, %s1541_s14 }
 0x335   :  { %p1548_p4 = por %p1547_p3, %p1546_p2 }
 0x337   :  { %955 = vmatmul.mubr.bf16.gmra.mxu0 %v737_v32  ;;  %p1549_p5 = pnand %p1548_p4, %p1542_p1 }
 0x338   :  { %962 = vmatprep.mubr.bf16.mxu0 %v1864_v61 }
 0x33f   :  { %963 = vmatmul.mubr.bf16.gmra.mxu0 %v738_v19 }
 0x3c7   :  { %v1318_v42 = vpop.f32.mrf.mxu0 }
 0x3c9   :  { %v1319_v16 = vpop.f32.mrf.mxu0 }
 0x3ca   :  { %v1320_v23 = vadd.f32 %v1319_v16, %v1318_v42 }
 0x3cb   :  { %v1321_v49 = vpop.f32.mrf.mxu0 }
 0x3cc   :  { %v909_v25 = vadd.f32 %v1320_v23, %v1939_v60 }
 0x3cd   :  { %v1322_v51 = vpop.f32.mrf.mxu0 }
 0x3ce   :  { %v1323_v13 = vadd.f32 %v1322_v51, %v1321_v49  ;;  %v971_v56 = vmax.f32 %v909_v25, 0.0 }
 0x3cf   :  { %v1324_v61 = vpop.f32.mrf.mxu0 }
 0x3d0   :  { %v912_v54 = vadd.f32 %v1323_v13, %v1939_v60 }
 0x3d1   :  { %v1325_v28 = vpop.f32.mrf.mxu0 }
 0x3d2   :  { %v972_v5 = vmax.f32 %v912_v54, 0.0  ;;  %v1326_v27 = vadd.f32 %v1325_v28, %v1324_v61 }
 0x3d3   :  { %v1327_v29 = vpop.f32.mrf.mxu0 }
 0x3d4   :  { %v1162_v34 = vpack.c.bf16 %v972_v5, %v971_v56  ;;  %v917_v7 = vadd.f32 %v1326_v27, %v1939_v60 }
 0x3d5   :  { %v1328_v10 = vpop.f32.mrf.mxu0 }
 0x3d6   :  { %1163 = vst [vmem:[#allocation8] sm:$0xff] %v1162_v34   ;;  %v1329_v22 = vadd.f32 %v1328_v10, %v1327_v29  ;;  %v973_v8 = vmax.f32 %v917_v7, 0.0 }
 0x3d7   :  { %v1330_v37 = vpop.f32.mrf.mxu0 }
 0x3d8   :  { %v920_v38 = vadd.f32 %v1329_v22, %v1939_v60 }
 0x3d9   :  { %v1331_v1 = vpop.f32.mrf.mxu0 }
 0x3da   :  { %v974_v62 = vmax.f32 %v920_v38, 0.0  ;;  %v1332_v33 = vadd.f32 %v1331_v1, %v1330_v37 }
 0x3db   :  { %v1333_v2 = vpop.f32.mrf.mxu0 }
 0x3dc   :  { %v1167_v0 = vpack.c.bf16 %v974_v62, %v973_v8  ;;  %v925_v59 = vadd.f32 %v1332_v33, %v1939_v60 }
 0x3dd   :  { %v1334_v9 = vpop.f32.mrf.mxu0 }
 0x3de   :  { %1199 = vst [vmem:[#allocation8 + $0x8] sm:$0xff] %v1167_v0   ;;  %v1335_v52 = vadd.f32 %v1334_v9, %v1333_v2  ;;  %v975_v20 = vmax.f32 %v925_v59, 0.0 }
 0x3df   :  { %v1336_v41 = vpop.f32.mrf.mxu0 }
 0x3e0   :  { %v928_v55 = vadd.f32 %v1335_v52, %v1939_v60 }
 0x3e1   :  { %v1337_v11 = vpop.f32.mrf.mxu0 }
 0x3e2   :  { %v976_v50 = vmax.f32 %v928_v55, 0.0  ;;  %v1338_v3 = vadd.f32 %v1337_v11, %v1336_v41 }
 0x3e3   :  { %v1339_v12 = vpop.f32.mrf.mxu0 }
 0x3e4   :  { %v1172_v44 = vpack.c.bf16 %v976_v50, %v975_v20  ;;  %v933_v43 = vadd.f32 %v1338_v3, %v1939_v60 }
 0x3e5   :  { %v1340_v53 = vpop.f32.mrf.mxu0 }
 0x3e6   :  { %1200 = vst [vmem:[#allocation8 + $0x10] sm:$0xff] %v1172_v44   ;;  %v1341_v58 = vadd.f32 %v1340_v53, %v1339_v12  ;;  %v977_v36 = vmax.f32 %v933_v43, 0.0 }
 0x3e7   :  { %v1342_v48 = vpop.f32.mrf.mxu0 }
 0x3e8   :  { %v936_v45 = vadd.f32 %v1341_v58, %v1939_v60 }
 0x3e9   :  { %v1343_v6 = vpop.f32.mrf.mxu0 }
 0x3ea   :  { %v978_v57 = vmax.f32 %v936_v45, 0.0  ;;  %v1344_v4 = vadd.f32 %v1343_v6, %v1342_v48 }
 0x3eb   :  { %v1345_v35 = vpop.f32.mrf.mxu0 }
 0x3ec   :  { %v1177_v14 = vpack.c.bf16 %v978_v57, %v977_v36  ;;  %v941_v17 = vadd.f32 %v1344_v4, %v1939_v60 }
 0x3ed   :  { %v1346_v40 = vpop.f32.mrf.mxu0 }
 0x3ee   :  { %1201 = vst [vmem:[#allocation8 + $0x18] sm:$0xff] %v1177_v14   ;;  %v1347_v15 = vadd.f32 %v1346_v40, %v1345_v35  ;;  %v979_v24 = vmax.f32 %v941_v17, 0.0 }
 0x3ef   :  { %v1348_v26 = vpop.f32.mrf.mxu0 }
 0x3f0   :  { %v944_v21 = vadd.f32 %v1347_v15, %v1939_v60 }
 0x3f1   :  { %v1349_v18 = vpop.f32.mrf.mxu0 }
 0x3f2   :  { %v980_v31 = vmax.f32 %v944_v21, 0.0  ;;  %v1350_v63 = vadd.f32 %v1349_v18, %v1348_v26 }
 0x3f3   :  { %v1351_v30 = vpop.f32.mrf.mxu0 }
 0x3f4   :  { %v1182_v47 = vpack.c.bf16 %v980_v31, %v979_v24  ;;  %v949_v46 = vadd.f32 %v1350_v63, %v1939_v60 }
 0x3f5   :  { %v1352_v32 = vpop.f32.mrf.mxu0 }
 0x3f6   :  { %1202 = vst [vmem:[#allocation8 + $0x20] sm:$0xff] %v1182_v47   ;;  %v1353_v39 = vadd.f32 %v1352_v32, %v1351_v30  ;;  %v981_v23 = vmax.f32 %v949_v46, 0.0 }
 0x3f7   :  { %v1354_v19 = vpop.f32.mrf.mxu0 }
 0x3f8   :  { %v952_v42 = vadd.f32 %v1353_v39, %v1939_v60 }
 0x3f9   :  { %v1355_v16 = vpop.f32.mrf.mxu0 }
 0x3fa   :  { %v982_v49 = vmax.f32 %v952_v42, 0.0  ;;  %v1356_v51 = vadd.f32 %v1355_v16, %v1354_v19 }
 0x3fb   :  { %v1357_v25 = vpop.f32.mrf.mxu0 }
 0x3fc   :  { %v1187_v13 = vpack.c.bf16 %v982_v49, %v981_v23  ;;  %v957_v54 = vadd.f32 %v1356_v51, %v1939_v60 }
 0x3fd   :  { %v1358_v61 = vpop.f32.mrf.mxu0 }
 0x3fe   :  { %1203 = vst [vmem:[#allocation8 + $0x28] sm:$0xff] %v1187_v13   ;;  %v1359_v28 = vadd.f32 %v1358_v61, %v1357_v25  ;;  %v983_v29 = vmax.f32 %v957_v54, 0.0 }
 0x3ff   :  { %v1360_v56 = vpop.f32.mrf.mxu0 }
 0x400   :  { %v960_v5 = vadd.f32 %v1359_v28, %v1939_v60 }
 0x401   :  { %v1361_v27 = vpop.f32.mrf.mxu0 }
 0x402   :  { %v984_v34 = vmax.f32 %v960_v5, 0.0  ;;  %v1362_v10 = vadd.f32 %v1361_v27, %v1360_v56 }
 0x403   :  { %v1363_v7 = vpop.f32.mrf.mxu0 }
 0x404   :  { %v1192_v22 = vpack.c.bf16 %v984_v34, %v983_v29  ;;  %v965_v38 = vadd.f32 %v1362_v10, %v1939_v60 }
 0x405   :  { %v1364_v37 = vpop.f32.mrf.mxu0 }
 0x406   :  { %1204 = vst [vmem:[#allocation8 + $0x30] sm:$0xff] %v1192_v22   ;;  %v1365_v1 = vadd.f32 %v1364_v37, %v1363_v7  ;;  %v985_v62 = vmax.f32 %v965_v38, 0.0 }
 0x408   :  { %v968_v8 = vadd.f32 %v1365_v1, %v1939_v60 }
 0x40a   :  { %v986_v33 = vmax.f32 %v968_v8, 0.0 }
 0x40c   :  { %v1197_v2 = vpack.c.bf16 %v986_v33, %v985_v62 }
 0x40e   :  { %1205 = vst [vmem:[#allocation8 + $0x38] sm:$0xff] %v1197_v2  }
 0x40f   :  { %1552 = shalt.err (!%p1549_p5)
}
 0x410   :  { %1078 = dma.vmem_to_hbm [thread:$0]  %s1073_s13, 1024, %s1970_s7, [#allocation4], %s1568_s27, %s1568_s27, %s1569_s28  }
 0x411   :  { %1565 = dma.done.wait [#allocation4], 1024  }
 0x412   :  { %1566 = vsyncadd [#allocation4], 4294966272 }
 0x413   :  { %1082 = vsyncpa [#allocation3], 1 }
 0x414   :  { %1083 = vsyncpa [#allocation6], 1 }
 0x415   :  { %1084 = vsyncpa [#allocation4], 1 }

</bundles_post_ra>
